<compile_context>
chip_gen: v5e
topology: v5e:2x2
jax: 0.10.0
libtpu: 0.0.40
codegen_flags: <defaults>
</compile_context>

<pallas_src>
from functools import partial

import jax
import jax.numpy as jnp
from jax.experimental import pallas as pl
from jax.experimental.pallas import tpu as pltpu

_EPS = 1e-5
# bf16 operands for the MXU matmuls (f32 accumulation).  Set to jnp.float32 for
# strict f32 parity at the cost of MXU throughput and 2x input/h traffic.
_MM_DTYPE = jnp.bfloat16
# Scoped VMEM: explicit and safe on all generations (v7x physical is 64 MiB).
_VMEM_LIMIT = 32 * 1024 * 1024


def _round_up(x, m):
    return (x + m - 1) // m * m


def _pad2(a, rows, cols):
    r, c = a.shape
    return jnp.pad(a, ((0, rows - r), (0, cols - c)))


def _pad1(v, n):
    v = v.reshape(-1).astype(jnp.float32)
    return jnp.pad(v, (0, n - v.shape[0]))


def _fused_scale_shift(stats, gamma, beta, batch):
    """(sum, sumsq) over the batch -> fused BN (scale, shift), f32."""
    mean = stats[0] / batch
    var = jnp.maximum(stats[1] / batch - mean * mean, 0.0)
    scale = gamma * jax.lax.rsqrt(var + _EPS)     # gamma * rstd
    shift = beta - mean * scale                   # beta - mean * scale
    return scale, shift


# --------------------------------------------------------------------------
# K1: per-tile partial (sum, sumsq) of the concatenated input (bf16 in, f32 acc)
# --------------------------------------------------------------------------
def _stats_kernel(x_ref, stats_ref):
    x = x_ref[...].astype(jnp.float32)            # (TB, Dp); padded rows are 0
    stats_ref[0:1, :] = jnp.sum(x, axis=0, keepdims=True)
    stats_ref[1:2, :] = jnp.sum(x * x, axis=0, keepdims=True)


# --------------------------------------------------------------------------
# K2: in_layer (bn2 pre-folded into W1/b1) + LeakyReLU; h -> bf16; partial stats
# --------------------------------------------------------------------------
def _hidden_kernel(x_ref, w1_ref, b1_ref, h_ref, stats_ref, *,
                   batch, tile_b, need_mask):
    h = jnp.dot(x_ref[...], w1_ref[...],
                preferred_element_type=jnp.float32) + b1_ref[...]
    h = jnp.where(h > 0, h, 0.1 * h)              # LeakyReLU(0.1), f32
    h_ref[...] = h.astype(h_ref.dtype)            # store bf16

    def write_stats(hm):
        stats_ref[0:1, :] = jnp.sum(hm, axis=0, keepdims=True)
        stats_ref[1:2, :] = jnp.sum(hm * hm, axis=0, keepdims=True)

    if need_mask:
        # only the last tile can contain batch-padding rows
        i = pl.program_id(0)
        last = pl.num_programs(0) - 1

        @pl.when(i == last)
        def _():
            rows = jax.lax.broadcasted_iota(jnp.int32, (tile_b, 1), 0) + i * tile_b
            write_stats(jnp.where(rows < batch, h, 0.0))

        @pl.when(i != last)
        def _():
            write_stats(h)
    else:
        write_stats(h)


# --------------------------------------------------------------------------
# K3: hidden_layer (bn pre-folded into W2/b2) -> penult; out = sum(relu(p)*w3)
# --------------------------------------------------------------------------
def _out_kernel(*refs, pack_out, out_lane):
    if pack_out:
        h_ref, w2_ref, b2w3_ref, penult_ref = refs
    else:
        h_ref, w2_ref, b2w3_ref, penult_ref, out_ref = refs

    p = jnp.dot(h_ref[...], w2_ref[...],
                preferred_element_type=jnp.float32) + b2w3_ref[0:1, :]
    r = jnp.maximum(p, 0.0)
    # width-1 out projection on the VPU (multiply) + XLU (lane reduce)
    o = jnp.sum(r * b2w3_ref[1:2, :], axis=-1, keepdims=True)   # (TB, 1) f32

    if pack_out:
        # pack `out` into a spare padding lane of penult -> single lane-dense store
        lane = jax.lax.broadcasted_iota(jnp.int32, p.shape, 1)
        penult_ref[...] = jnp.where(lane == out_lane, o, p)
    else:
        penult_ref[...] = p
        out_ref[...] = o


# --------------------------------------------------------------------------
# Wrapper
# --------------------------------------------------------------------------
def mlp_2hl_forward(x, lower_f, params, *, tile_b=1024):
    """Fused forward.  Returns (penultimate_out [B, H2], out [B]).

    tile_b: batch rows per grid step (multiple of 8).  Size it so
    2 * (x_tile + h_tile + penult_tile) + resident weights stays under the
    VMEM limit; 1024 is comfortable for 128-lane features on every generation.
    """
    f32 = jnp.float32
    if lower_f is not None:
        xin = jnp.concatenate([x, lower_f], axis=1)     # fused into pad/cast below
        apply_bn2 = True
    else:
        xin = x
        apply_bn2 = False

    B, Din = xin.shape
    H1 = params["w1"].shape[1]
    H2 = params["w2"].shape[1]

    # pad features to full 128-lane tiles; pad batch to a multiple of the tile
    Dp = _round_up(Din, 128)
    H1p = _round_up(H1, 128)
    H2p = _round_up(H2, 128)
    TB = min(_round_up(B, 8), _round_up(tile_b, 8))
    Bp = _round_up(B, TB)
    NT = Bp // TB
    need_mask = (Bp != B)

    # single staged copy of the (concatenated) input: lane/batch padded, bf16
    xin_p = _pad2(xin.astype(f32), Bp, Dp).astype(_MM_DTYPE)

    cp = pltpu.CompilerParams(dimension_semantics=("parallel",),
                              vmem_limit_bytes=_VMEM_LIMIT)

    w1_f = _pad2(params["w1"].astype(f32), Dp, H1p)
    b1_f = _pad1(params["b1"], H1p)

    # ---- K1: bn2 statistics (partials) -> fold (scale, shift) into W1/b1 ----
    if apply_bn2:
        part2 = pl.pallas_call(
            _stats_kernel,
            grid=(NT,),
            in_specs=[pl.BlockSpec((TB, Dp), lambda i: (i, 0))],
            out_specs=pl.BlockSpec((None, 2, Dp), lambda i: (i, 0, 0)),
            out_shape=jax.ShapeDtypeStruct((NT, 2, Dp), f32),
            compiler_params=cp,
        )(xin_p)
        stats2 = jnp.sum(part2, axis=0)                         # (2, Dp)
        scale2, shift2 = _fused_scale_shift(
            stats2, _pad1(params["bn2_gamma"], Dp), _pad1(params["bn2_beta"], Dp), B)
        w1_eff = (scale2[:, None] * w1_f).astype(_MM_DTYPE)
        b1_eff = (b1_f + shift2 @ w1_f).reshape(1, H1p)
    else:
        w1_eff = w1_f.astype(_MM_DTYPE)
        b1_eff = b1_f.reshape(1, H1p)

    # ---- K2: in_layer + LeakyReLU; h stored bf16; partial stats of h ----
    h_p, part_h = pl.pallas_call(
        partial(_hidden_kernel, batch=B, tile_b=TB, need_mask=need_mask),
        grid=(NT,),
        in_specs=[pl.BlockSpec((TB, Dp), lambda i: (i, 0)),
                  pl.BlockSpec((Dp, H1p), lambda i: (0, 0)),
                  pl.BlockSpec((1, H1p), lambda i: (0, 0))],
        out_specs=(pl.BlockSpec((TB, H1p), lambda i: (i, 0)),
                   pl.BlockSpec((None, 2, H1p), lambda i: (i, 0, 0))),
        out_shape=(jax.ShapeDtypeStruct((Bp, H1p), _MM_DTYPE),
                   jax.ShapeDtypeStruct((NT, 2, H1p), f32)),
        compiler_params=cp,
    )(xin_p, w1_eff, b1_eff)

    # ---- fold bn (scale, shift) into W2/b2 (tiny XLA ops) ----
    stats_h = jnp.sum(part_h, axis=0)                           # (2, H1p)
    scale_h, shift_h = _fused_scale_shift(
        stats_h, _pad1(params["bn_gamma"], H1p), _pad1(params["bn_beta"], H1p), B)
    w2_f = _pad2(params["w2"].astype(f32), H1p, H2p)
    w2_eff = (scale_h[:, None] * w2_f).astype(_MM_DTYPE)
    b2_eff = _pad1(params["b2"], H2p) + shift_h @ w2_f
    w3_row = _pad1(params["w3"], H2p)                           # (H2p,) out weights
    b2w3 = jnp.stack([b2_eff, w3_row], axis=0)                  # (2, H2p) f32

    # ---- K3: hidden_layer -> penult; out packed into a spare lane ----
    pack_out = H2 < H2p
    out_lane = H2p - 1
    k3_in_specs = [pl.BlockSpec((TB, H1p), lambda i: (i, 0)),
                   pl.BlockSpec((H1p, H2p), lambda i: (0, 0)),
                   pl.BlockSpec((2, H2p), lambda i: (0, 0))]

    if pack_out:
        penult_p = pl.pallas_call(
            partial(_out_kernel, pack_out=True, out_lane=out_lane),
            grid=(NT,),
            in_specs=k3_in_specs,
            out_specs=pl.BlockSpec((TB, H2p), lambda i: (i, 0)),
            out_shape=jax.ShapeDtypeStruct((Bp, H2p), f32),
            compiler_params=cp,
        )(h_p, w2_eff, b2w3)
        out_vec = penult_p[:B, out_lane]
    else:
        penult_p, out_p = pl.pallas_call(
            partial(_out_kernel, pack_out=False, out_lane=out_lane),
            grid=(NT,),
            in_specs=k3_in_specs,
            out_specs=(pl.BlockSpec((TB, H2p), lambda i: (i, 0)),
                       pl.BlockSpec((TB, 1), lambda i: (i, 0))),
            out_shape=(jax.ShapeDtypeStruct((Bp, H2p), f32),
                       jax.ShapeDtypeStruct((Bp, 1), f32)),
            compiler_params=cp,
        )(h_p, w2_eff, b2w3)
        out_vec = out_p[:B, 0]

    penult = penult_p[:B, :H2]
    out = jnp.squeeze(out_vec + params["b3"].astype(f32).reshape(-1)[0])
    return penult, out


# --------------------------------------------------------------------------
# Parameter init (mirrors nn.Linear / nn.BatchNorm1d defaults)
# --------------------------------------------------------------------------
def init_params(key, dim_in, dim_hidden1, dim_hidden2):
    ks = jax.random.split(key, 6)

    def lin(kw, kb, fan_in, fan_out):
        bound = 1.0 / jnp.sqrt(jnp.float32(fan_in))
        w = jax.random.uniform(kw, (fan_in, fan_out), jnp.float32, -bound, bound)
        b = jax.random.uniform(kb, (fan_out,), jnp.float32, -bound, bound)
        return w, b

    w1, b1 = lin(ks[0], ks[1], dim_in, dim_hidden1)
    w2, b2 = lin(ks[2], ks[3], dim_hidden1, dim_hidden2)
    w3, b3 = lin(ks[4], ks[5], dim_hidden2, 1)

    return {
        "bn2_gamma": jnp.ones((dim_in,), jnp.float32),
        "bn2_beta": jnp.zeros((dim_in,), jnp.float32),
        "w1": w1, "b1": b1,
        "bn_gamma": jnp.ones((dim_hidden1,), jnp.float32),
        "bn_beta": jnp.zeros((dim_hidden1,), jnp.float32),
        "w2": w2, "b2": b2,
        "w3": w3, "b3": b3,
    }


# --------------------------------------------------------------------------
# Pure-JAX f32 reference (training-mode BN), for validation
# --------------------------------------------------------------------------
def _ref_forward(x, lower_f, params):
    if lower_f is not None:
        xin = jnp.concatenate([x, lower_f], axis=1)
        mu = xin.mean(0)
        var = ((xin - mu) ** 2).mean(0)
        xin = (xin - mu) * jax.lax.rsqrt(var + _EPS) * params["bn2_gamma"] + params["bn2_beta"]
    else:
        xin = x
    h = xin @ params["w1"] + params["b1"]
    h = jnp.where(h > 0, h, 0.1 * h)
    mu = h.mean(0)
    var = ((h - mu) ** 2).mean(0)
    h = (h - mu) * jax.lax.rsqrt(var + _EPS) * params["bn_gamma"] + params["bn_beta"]
    p = h @ params["w2"] + params["b2"]
    o = jnp.maximum(p, 0.0) @ params["w3"] + params["b3"]
    return p, jnp.squeeze(o)


if __name__ == "__main__":
    key = jax.random.PRNGKey(0)
    k_x, k_lf, k_p0, k_p1 = jax.random.split(key, 4)

    batch, feat_d, hidden_d = 8, 16, 32

    x = jax.random.normal(k_x, (batch, feat_d), jnp.float32)
    lower_f = jax.random.normal(k_lf, (batch, hidden_d), jnp.float32)

    # stage > 0: input is cat([x, lower_f]) and bn2 is applied (folded into W1)
    params1 = init_params(k_p1, feat_d + hidden_d, hidden_d, hidden_d)
    penult1, out1 = mlp_2hl_forward(x, lower_f, params1)
    jax.block_until_ready((penult1, out1))
    assert penult1.shape == (batch, hidden_d)
    assert out1.shape == (batch,)

    # stage == 0: no lower_f, bn2 skipped entirely (no K1, no dead DMA)
    params0 = init_params(k_p0, feat_d, hidden_d, hidden_d)
    penult0, out0 = mlp_2hl_forward(x, None, params0)
    jax.block_until_ready((penult0, out0))
    assert penult0.shape == (batch, hidden_d)
    assert out0.shape == (batch,)

    # correctness vs pure-f32 reference (bf16 operands/intermediates -> loose tol)
    rp1, ro1 = _ref_forward(x, lower_f, params1)
    rp0, ro0 = _ref_forward(x, None, params0)
    assert jnp.allclose(penult1, rp1, atol=0.1, rtol=0.1)
    assert jnp.allclose(out1, ro1, atol=0.1, rtol=0.1)
    assert jnp.allclose(penult0, rp0, atol=0.1, rtol=0.1)
    assert jnp.allclose(out0, ro0, atol=0.1, rtol=0.1)

    print("KERNEL_OK")
</pallas_src>

<mosaic_0001>
module attributes {stable_mosaic.version = 11 : i64} {
  func.func @_stats_kernel(%arg0: i32, %arg1: memref<8x128xbf16, #tpu.memory_space<vmem>>, %arg2: memref<1x2x128xf32, #tpu.memory_space<vmem>>) attributes {dimension_semantics = [#tpu.dimension_semantics<parallel>], iteration_bounds = array<i64: 1>, scalar_prefetch = 0 : i64, scratch_operands = 0 : i64, tpu.core_type = #tpu.core_type<tc>, window_params = [{transform_indices = @transform_0, window_bounds = array<i64: 8, 128>}, {transform_indices = @transform_1, window_bounds = array<i64: 1, 2, 128>}]} {
    %c0 = arith.constant 0 : index
    %c0_0 = arith.constant 0 : index
    %0 = vector.load %arg1[%c0, %c0_0] : memref<8x128xbf16, #tpu.memory_space<vmem>>, vector<8x128xbf16>
    %1 = arith.extf %0 : vector<8x128xbf16> to vector<8x128xf32>
    %cst = arith.constant dense<0.000000e+00> : vector<128xf32>
    %2 = vector.multi_reduction <add>, %1, %cst [0] : vector<8x128xf32> to vector<128xf32>
    %3 = vector.shape_cast %2 : vector<128xf32> to vector<1x128xf32>
    %c0_1 = arith.constant 0 : index
    %c0_2 = arith.constant 0 : index
    %c0_3 = arith.constant 0 : index
    %4 = vector.load %arg2[%c0_1, %c0_2, %c0_3] : memref<1x2x128xf32, #tpu.memory_space<vmem>>, vector<1x1x128xf32>
    %5 = vector.shape_cast %4 : vector<1x1x128xf32> to vector<1x128xf32>
    %6 = vector.shape_cast %3 : vector<1x128xf32> to vector<1x1x128xf32>
    tpu.vector_store %arg2[%c0_1, %c0_2, %c0_3], %6 {strides = array<i32>} : memref<1x2x128xf32, #tpu.memory_space<vmem>>, vector<1x1x128xf32>,
    %7 = arith.mulf %1, %1 : vector<8x128xf32>
    %cst_4 = arith.constant dense<0.000000e+00> : vector<128xf32>
    %8 = vector.multi_reduction <add>, %7, %cst_4 [0] : vector<8x128xf32> to vector<128xf32>
    %9 = vector.shape_cast %8 : vector<128xf32> to vector<1x128xf32>
    %c0_5 = arith.constant 0 : index
    %c1 = arith.constant 1 : index
    %c0_6 = arith.constant 0 : index
    %10 = vector.load %arg2[%c0_5, %c1, %c0_6] : memref<1x2x128xf32, #tpu.memory_space<vmem>>, vector<1x1x128xf32>
    %11 = vector.shape_cast %10 : vector<1x1x128xf32> to vector<1x128xf32>
    %12 = vector.shape_cast %9 : vector<1x128xf32> to vector<1x1x128xf32>
    tpu.vector_store %arg2[%c0_5, %c1, %c0_6], %12 {strides = array<i32>} : memref<1x2x128xf32, #tpu.memory_space<vmem>>, vector<1x1x128xf32>,
    return
  }
  func.func @transform_0(%arg0: i32) -> (i32, i32) {
    %c0_i32 = arith.constant 0 : i32
    %c0_i32_0 = arith.constant 0 : i32
    return %arg0, %c0_i32 : i32, i32
  }
  func.func @transform_1(%arg0: i32) -> (i32, i32, i32) {
    %c0_i32 = arith.constant 0 : i32
    %c0_i32_0 = arith.constant 0 : i32
    %c0_i32_1 = arith.constant 0 : i32
    return %arg0, %c0_i32, %c0_i32_0 : i32, i32, i32
  }
}

</mosaic_0001>

<bundles_post_ra>
// kernel: tpu_custom_call.1
= control target key start
LH: loop header
LB: loop body
LE: loop exit
PB: predicated region body
PF: predicated region fallthrough
CT: control target
= control target key end

     0   :  { %6 = vsyncpa [#allocation3], 0  ;;  %s129_s0 = inlined_call_operand.hbm [shape: bf16[8,128], index: 0, kind: input, shape index: {}]   ;;  %s130_s1 = inlined_call_operand.hbm [shape: f32[1,2,128], index: 1, kind: output, shape index: {}]  }
   0x1   :  { %7 = vsyncpa [#allocation4], 0  ;;  %s13_s8 = sshll.u32 %s129_s0, 4  ;;  %s111_s9 = smov [#allocation2]   ;;  %s14_s8 = int_to_ptr.hbm [resolvable:$true] %s13_s8 }
   0x2   :  { %s15_s10 = sshll.u32 %s111_s9, 4  ;;  %s16_s10 = int_to_ptr.vmem [resolvable:$true] %s15_s10 }
   0x3   :  { %18 = dma.hbm_to_vmem [thread:$0]  %s14_s8, 64, %s16_s10, [#allocation3]  }
   0x4   :  { %107 = dma.done.wait [#allocation3], 64  }
   0x5   :  { %108 = vsyncadd [#allocation3], 4294967232  ;;  %v23_v0 = vld [vmem:[#allocation2] sm:$0xf]  ;;  %s112_s0 = smov [#allocation5]   ;;  %s47_s14 = sshll.u32 %s130_s1, 4  ;;  %s48_s14 = int_to_ptr.hbm [resolvable:$true] %s47_s14 }
   0x6   :  { %v24_v1 = vunpack.c.l.bf16 %v23_v0  ;;  %s45_s11 = sshll.u32 %s112_s0, 4  ;;  %s46_s11 = int_to_ptr.vmem [resolvable:$true] %s45_s11 }
   0x8   :  { %v25_v2 = vrot.slane %v24_v1, 4  ;;  %v32_v3 = vmul.f32 %v24_v1, %v24_v1 }
   0xa   :  { %v26_v4 = vadd.f32 %v25_v2, %v24_v1  ;;  %v33_v5 = vrot.slane %v32_v3, 4 }
   0xc   :  { %v27_v6 = vrot.slane %v26_v4, 2  ;;  %v34_v7 = vadd.f32 %v33_v5, %v32_v3 }
   0xe   :  { %v28_v8 = vadd.f32 %v27_v6, %v26_v4  ;;  %v35_v9 = vrot.slane %v34_v7, 2 }
  0x10   :  { %v29_v10 = vrot.slane %v28_v8, 1  ;;  %v36_v11 = vadd.f32 %v35_v9, %v34_v7 }
  0x12   :  { %v30_v12 = vadd.f32 %v29_v10, %v28_v8  ;;  %v37_v13 = vrot.slane %v36_v11, 1 }
  0x14   :  { %31 = vst [vmem:[#allocation5] sm:$0x1] %v30_v12  ;;  %v38_v14 = vadd.f32 %v37_v13, %v36_v11 }
  0x16   :  { %39 = vst [vmem:[#allocation5 + $0x1] sm:$0x1] %v38_v14 }
  0x17   :  { %50 = dma.vmem_to_hbm [thread:$0]  %s46_s11, 32, %s48_s14, [#allocation4]  }
  0x18   :  { %109 = dma.done.wait [#allocation4], 32  }
  0x19   :  { %110 = vsyncadd [#allocation4], 4294967264 }
  0x1a   :  { %55 = vsyncpa [#allocation3], 1 }
  0x1b   :  { %56 = vsyncpa [#allocation4], 1 }

</bundles_post_ra>
